<compile_context>
chip_gen: v5e
topology: v5e:2x2
jax: 0.10.0
libtpu: 0.0.40
codegen_flags: <defaults>
</compile_context>

<pallas_src>
import math

import jax
import jax.numpy as jnp
from jax.experimental import pallas as pl
from jax.experimental.pallas import tpu as pltpu


def _round_up(a: int, b: int) -> int:
    return (a + b - 1) // b * b


def _sublane_unit(dtype) -> int:
    """Minimum sublane multiple for a dtype (sub-32-bit dtypes pack sublanes)."""
    itemsize = jnp.dtype(dtype).itemsize
    return {4: 8, 2: 16, 1: 32}.get(itemsize, 8)


def _matmul_kernel_inplace(x_ref, w_ref, o_ref):
    """f32 output: accumulate directly into the resident output block."""
    @pl.when(pl.program_id(2) == 0)
    def _():
        o_ref[...] = jnp.zeros_like(o_ref)

    o_ref[...] += jnp.dot(
        x_ref[...], w_ref[...], preferred_element_type=jnp.float32
    )


def _matmul_kernel_scratch(x_ref, w_ref, o_ref, acc_ref):
    """Non-f32 output: f32 VMEM accumulator, flushed on the last K step."""
    @pl.when(pl.program_id(2) == 0)
    def _():
        acc_ref[...] = jnp.zeros_like(acc_ref)

    acc_ref[...] += jnp.dot(
        x_ref[...], w_ref[...], preferred_element_type=jnp.float32
    )

    @pl.when(pl.program_id(2) == pl.num_programs(2) - 1)
    def _():
        o_ref[...] = acc_ref[...].astype(o_ref.dtype)


def depthwise_separable_linear(x, weight, *, tm=1024, tn=512, tk=512):
    """Pointwise linear: y = x @ weight.T (no bias).

    x:      (..., in_features)
    weight: (out_features, in_features)  -- native nn.Linear layout.
    """
    *lead, k = x.shape
    n, k_w = weight.shape
    assert k_w == k, "weight.shape[1] must match x.shape[-1]"
    m = math.prod(lead) if lead else 1
    x2d = x.reshape(m, k)

    out_dtype = x.dtype
    x_bytes = jnp.dtype(x.dtype).itemsize
    w_bytes = jnp.dtype(weight.dtype).itemsize
    o_bytes = jnp.dtype(out_dtype).itemsize

    # Dtype-aware sublane rounding; tm is shared by the x tile and the out tile.
    sub = max(_sublane_unit(x.dtype), _sublane_unit(out_dtype))

    # Adaptive tile sizes: shrink for small problems, keep lane-dense (mult of 128)
    # and sublane-aligned tiles.
    tm = max(sub, min(tm, _round_up(m, sub)))
    tn = max(128, min(tn, _round_up(n, 128)))
    tk = max(128, min(tk, _round_up(k, 128)))

    # v7x megacore: ensure at least 2 tiles on one "parallel" axis when possible.
    if pl.cdiv(m, tm) == 1 and pl.cdiv(n, tn) == 1:
        if tn >= 256:
            tn = _round_up(tn // 2, 128)
        elif tm >= 2 * sub:
            tm = _round_up(tm // 2, sub)

    kp = _round_up(k, tk)
    np_ = _round_up(n, tn)

    # Only the contraction dim K needs explicit zero padding (garbage in a K
    # remainder would corrupt the sum). M / N remainders are handled by partial
    # blocks whose out-of-range rows/cols never survive the final slice.
    if kp != k:
        x2d = jnp.pad(x2d, ((0, 0), (0, kp - k)))

    # One-time transpose to (K, N): the kernel then uses a plain contraction
    # (no per-tile RHS transpose). The weight is small and re-used by every
    # M tile, so this is amortized. Pad K (correctness) and N (cheap, avoids
    # partial weight blocks) while we are already copying it.
    w_t = weight.T
    if kp != k or np_ != n:
        w_t = jnp.pad(w_t, ((0, kp - k), (0, np_ - n)))

    grid = (pl.cdiv(m, tm), np_ // tn, kp // tk)
    gm, gn, gk = grid

    use_inplace = jnp.dtype(out_dtype) == jnp.float32
    if use_inplace:
        kernel = _matmul_kernel_inplace
        scratch_shapes = []
    else:
        kernel = _matmul_kernel_scratch
        scratch_shapes = [pltpu.VMEM((tm, tn), jnp.float32)]

    # VMEM budget: double-buffered x / w / out tiles (+ f32 scratch) + slack.
    tile_bytes = 2 * (tm * tk * x_bytes + tk * tn * w_bytes + tm * tn * o_bytes)
    if not use_inplace:
        tile_bytes += tm * tn * 4
    vmem_limit = int(min(max(tile_bytes + (8 << 20), 32 << 20), 64 << 20))

    # Bytes accessed reflects tiled re-reads: x streamed gn times, w gm times.
    cost = pl.CostEstimate(
        flops=2 * m * n * k,
        transcendentals=0,
        bytes_accessed=(
            m * kp * gn * x_bytes + kp * np_ * gm * w_bytes + m * np_ * o_bytes
        ),
    )

    out = pl.pallas_call(
        kernel,
        out_shape=jax.ShapeDtypeStruct((m, np_), out_dtype),
        grid_spec=pltpu.PrefetchScalarGridSpec(
            num_scalar_prefetch=0,
            grid=grid,
            in_specs=[
                pl.BlockSpec((tm, tk), lambda i, j, kk: (i, kk)),  # x tile (M, K)
                pl.BlockSpec((tk, tn), lambda i, j, kk: (kk, j)),  # w tile (K, N)
            ],
            out_specs=pl.BlockSpec((tm, tn), lambda i, j, kk: (i, j)),
            scratch_shapes=scratch_shapes,
        ),
        compiler_params=pltpu.CompilerParams(
            dimension_semantics=("parallel", "parallel", "arbitrary"),
            vmem_limit_bytes=vmem_limit,
        ),
        cost_estimate=cost,
    )(x2d, w_t)

    out = out[:, :n]
    return out.reshape(*lead, n)


if __name__ == "__main__":
    key = jax.random.PRNGKey(0)
    kx, kw, kx2, kw2, kx3, kw3 = jax.random.split(key, 6)

    # --- 1) Small demo consistent with the module: pointwise Linear (bias=False). ---
    batch, seq = 2, 8
    in_features, out_features = 32, 64
    x = jax.random.normal(kx, (batch, seq, in_features), dtype=jnp.float32)
    bound = 1.0 / math.sqrt(in_features)  # mimic nn.Linear uniform init, bias=False
    weight = jax.random.uniform(
        kw, (out_features, in_features), dtype=jnp.float32,
        minval=-bound, maxval=bound,
    )
    y = jax.block_until_ready(depthwise_separable_linear(x, weight))
    y_ref = jnp.einsum("bsk,nk->bsn", x, weight)
    assert y.shape == (batch, seq, out_features)
    assert jnp.allclose(y, y_ref, atol=1e-5, rtol=1e-5)

    # --- 2) Multi-tile (i, j, k) grid with an unaligned M remainder:
    #        exercises partial M blocks + K-axis accumulation (inplace kernel). ---
    m2, k2, n2 = 40, 256, 384
    x2 = jax.random.normal(kx2, (m2, k2), dtype=jnp.float32)
    w2 = jax.random.normal(kw2, (n2, k2), dtype=jnp.float32) * 0.05
    y2 = jax.block_until_ready(
        depthwise_separable_linear(x2, w2, tm=16, tn=128, tk=128))  # grid (3, 3, 2)
    y2_ref = x2 @ w2.T
    assert jnp.allclose(y2, y2_ref, atol=1e-4, rtol=1e-4)

    # --- 3) bf16 path: dtype-aware sublane tiling + f32 scratch accumulator. ---
    m3, k3, n3 = 32, 256, 128
    x3 = jax.random.normal(kx3, (m3, k3), dtype=jnp.float32).astype(jnp.bfloat16)
    w3 = (jax.random.normal(kw3, (n3, k3), dtype=jnp.float32) * 0.05).astype(jnp.bfloat16)
    y3 = jax.block_until_ready(depthwise_separable_linear(x3, w3))
    y3_ref = jnp.dot(x3.astype(jnp.float32), w3.T.astype(jnp.float32))
    assert jnp.allclose(y3.astype(jnp.float32), y3_ref, atol=5e-2, rtol=5e-2)

    print("KERNEL_OK")
</pallas_src>

<mosaic_0001>
module attributes {stable_mosaic.version = 11 : i64} {
  func.func @_matmul_kernel_inplace(%arg0: i32, %arg1: i32, %arg2: i32, %arg3: memref<8x128xf32, #tpu.memory_space<vmem>>, %arg4: memref<128x128xf32, #tpu.memory_space<vmem>>, %arg5: memref<8x128xf32, #tpu.memory_space<vmem>>) attributes {dimension_semantics = [#tpu.dimension_semantics<parallel>, #tpu.dimension_semantics<parallel>, #tpu.dimension_semantics<arbitrary>], iteration_bounds = array<i64: 2, 1, 1>, scalar_prefetch = 0 : i64, scratch_operands = 0 : i64, tpu.core_type = #tpu.core_type<tc>, window_params = [{transform_indices = @transform_0, window_bounds = array<i64: 8, 128>}, {transform_indices = @transform_1, window_bounds = array<i64: 128, 128>}, {transform_indices = @transform_2, window_bounds = array<i64: 8, 128>}]} {
    %c0_i32 = arith.constant 0 : i32
    %0 = arith.cmpi eq, %arg2, %c0_i32 : i32
    %1 = arith.extui %0 : i1 to i32
    %c0_i32_0 = arith.constant 0 : i32
    %2 = arith.cmpi ne, %1, %c0_i32_0 : i32
    scf.if %2 {
      %cst_8 = arith.constant 0.000000e+00 : f32
      %9 = vector.broadcast %cst_8 : f32 to vector<8x128xf32>
      %c0_9 = arith.constant 0 : index
      %c0_10 = arith.constant 0 : index
      %10 = vector.load %arg5[%c0_9, %c0_10] : memref<8x128xf32, #tpu.memory_space<vmem>>, vector<8x128xf32>
      tpu.vector_store %arg5[%c0_9, %c0_10], %9 {strides = array<i32>} : memref<8x128xf32, #tpu.memory_space<vmem>>, vector<8x128xf32>,
    } else {
    }
    %c0 = arith.constant 0 : index
    %c0_1 = arith.constant 0 : index
    %3 = vector.load %arg5[%c0, %c0_1] : memref<8x128xf32, #tpu.memory_space<vmem>>, vector<8x128xf32>
    %c0_2 = arith.constant 0 : index
    %c0_3 = arith.constant 0 : index
    %4 = vector.load %arg3[%c0_2, %c0_3] : memref<8x128xf32, #tpu.memory_space<vmem>>, vector<8x128xf32>
    %c0_4 = arith.constant 0 : index
    %c0_5 = arith.constant 0 : index
    %5 = vector.load %arg4[%c0_4, %c0_5] : memref<128x128xf32, #tpu.memory_space<vmem>>, vector<128x128xf32>
    %cst = arith.constant dense<0.000000e+00> : vector<8x128xf32>
    %6 = tpu.matmul %4, %5, %cst {dimension_numbers = #tpu.dot_dimension_numbers<[1], [0], [0], [1], [0, 0, 1, 1], [], []>} : vector<8x128xf32>, vector<128x128xf32>, vector<8x128xf32> -> vector<8x128xf32>
    %7 = arith.addf %3, %6 : vector<8x128xf32>
    %c0_6 = arith.constant 0 : index
    %c0_7 = arith.constant 0 : index
    %8 = vector.load %arg5[%c0_6, %c0_7] : memref<8x128xf32, #tpu.memory_space<vmem>>, vector<8x128xf32>
    tpu.vector_store %arg5[%c0_6, %c0_7], %7 {strides = array<i32>} : memref<8x128xf32, #tpu.memory_space<vmem>>, vector<8x128xf32>,
    return
  }
  func.func @transform_0(%arg0: i32, %arg1: i32, %arg2: i32) -> (i32, i32) {
    %c0_i32 = arith.constant 0 : i32
    return %arg0, %arg2 : i32, i32
  }
  func.func @transform_1(%arg0: i32, %arg1: i32, %arg2: i32) -> (i32, i32) {
    %c0_i32 = arith.constant 0 : i32
    return %arg2, %arg1 : i32, i32
  }
  func.func @transform_2(%arg0: i32, %arg1: i32, %arg2: i32) -> (i32, i32) {
    %c0_i32 = arith.constant 0 : i32
    return %arg0, %arg1 : i32, i32
  }
}

</mosaic_0001>

<bundles_post_ra>
// kernel: tpu_custom_call.1
= control target key start
LH: loop header
LB: loop body
LE: loop exit
PB: predicated region body
PF: predicated region fallthrough
CT: control target
= control target key end

     0   :  { %7 = vsyncpa [#allocation3], 0  ;;  %s780_s0 = inlined_call_operand.hbm [shape: f32[16,128], index: 0, kind: input, shape index: {}]   ;;  %s781_s1 = inlined_call_operand.hbm [shape: f32[128,128], index: 1, kind: input, shape index: {}]   ;;  %s782_s2 = inlined_call_operand.hbm [shape: f32[16,128], index: 2, kind: output, shape index: {}]  }
   0x1   :  { %9 = vsyncpa [#allocation3 + $0x1], 0 }
   0x2   :  { %10 = vsyncpa [#allocation6], 0 }
   0x3   :  { %11 = vsyncpa [#allocation4], 0 }
   0x4   :  { %13 = vsyncpa [#allocation4 + $0x1], 0  ;;  %s630_s9 = smov 0   ;;  %s632_s10 = smov 0  }
   0x5   :  { %s634_s11 = smov 0   ;;  %s636_s12 = smov 0  }
   0x6   :  { %s638_s13 = smov 0   ;;  %s640_s14 = smov 0  }
   0x7 LB: > { %s373_s15 = sadd.s32 4294967295, %s610_s14   ;;  %p375_p0 = scmp.ge.s32.totalorder %s610_s14, 1  ;;  %s610_s14 = sphi %s640_s14, %s19_s14   ;;  %s606_s13 = sphi %s638_s13, %s793_s13   ;;  %s602_s12 = sphi %s636_s12, %s792_s12   ;;  %s598_s11 = sphi %s634_s11, %s791_s11   ;;  %s594_s10 = sphi %s632_s10, %s790_s10   ;;  %s590_s9 = sphi %s630_s9, %s789_s9  }
   0x8   : > { %p662_p1 = scmp.eq.s32.totalorder %s373_s15, 0  ;;  %p127_p2 = scmp.lt.s32.totalorder %s610_s14, 3 }
   0x9   : > { %s142_s19 = sshll.u32 %s781_s1, 4  ;;  %s612_s21 = smov [#allocation5]   ;;  %s143_s19 = int_to_ptr.hbm [resolvable:$true] %s142_s19 }
   0xa   : > { %p670_p3 = pnand %p375_p0, %p127_p2  ;;  %s144_s22 = sshll.u32 %s612_s21, 4  ;;  %s145_s22 = int_to_ptr.vmem [resolvable:$true] %s144_s22 }
   0xb   : > { %p377_p6 = scmp.ge.s32.totalorder %s610_s14, 2  ;;  %s613_s23 = smov 128  }
   0xc   : > { %p396_p4 = pneg %p670_p3  ;;  %s614_s24 = smov 8  }
   0xd   : > { %s374_s25 = sadd.s32 4294967294, %s610_s14   ;;  %s38_s26 = sadd.s32 1, %s606_s13 }
   0xe   : > { %p397_p5 = pnand %p396_p4, %p662_p1  ;;  %s47_s27 = sadd.s32 1, %s598_s11 }
   0xf   : > { %p40_p7 = scmp.ge.s32.totalorder %s38_s26, 2  ;;  %p54_p8 = scmp.ne.s32.totalorder %s598_s11, %s594_s10 }
  0x10   : > { %399 = dma.hbm_to_vmem [thread:$0]  (!%p397_p5), %s143_s19, 2048, %s145_s22, [#allocation6], %s613_s23, %s613_s23, %s614_s24  }
  0x11   : > { %p55_p9 = scmp.eq.s32.totalorder %s610_s14, 0  ;;  %p60_p10 = scmp.ne.s32.totalorder %s594_s10, %s590_s9 }
  0x12   : > { %s795_s26 = smov (%p40_p7, %s38_s26), 0  ;;  %p114_p13 = scmp.eq.s32.totalorder %s373_s15, 1 }
  0x13   : > { %p689_p11 = por %p55_p9, %p54_p8  ;;  %p695_p12 = por %p662_p1, %p60_p10 }
  0x14   : > { %s42_s30 = ssub.s32 %s606_s13, %s795_s26  ;;  %p120_p2 = scmp.eq.s32.totalorder %s374_s25, 1 }
  0x15   : > { %p45_p0 = scmp.eq.s32.totalorder %s42_s30, 0  ;;  %p701_p4 = por %p114_p13, %p54_p8 }
  0x16   : > { %p409_p5 = scmp.lt.s32.totalorder %s610_s14, 2  ;;  %p709_p7 = por %p120_p2, %p60_p10 }
  0x17   : > { %s707_s4 = scalar_select %p45_p0, %s598_s11, %s47_s27  }
  0x18   : > { %s158_s6 = sand.u32 1, %s598_s11   ;;  %s379_s8 = sshll.u32 %s606_s13, 3 }
  0x19   : > { %s378_s7 = sshll.u32 %s158_s6, 3  ;;  %s167_s15 = scalar_lea.hbm %s780_s0, %s379_s8 }
  0x1a   : > { %s162_s19 = scalar_lea.vmem [#allocation2], %s378_s7  ;;  %s169_s22 = sshll.u32 %s167_s15, 4  ;;  %s170_s22 = int_to_ptr.hbm [resolvable:$true] %s169_s22 }
  0x1b   : > { %s171_s21 = sshll.u32 %s162_s19, 4  ;;  %p401_p8 = pnand %p409_p5, %p689_p11  ;;  %s172_s21 = int_to_ptr.vmem [resolvable:$true] %s171_s21 }
  0x1c   : > { %s159_s23 = scalar_lea.sflag [#allocation3], %s158_s6  ;;  %180 = sbr.rel (%p670_p3) target bundleno = 197 (0xc5), region = 28 }
  0x1d   : > { %403 = dma.hbm_to_vmem [thread:$0]  (!%p401_p8), %s170_s22, 128, %s172_s21, %s159_s23  }
  0x1e   : > { %s723_s24 = sand.u32 (!%p670_p3), 1, %s594_s10  }
  0x1f   : > { %s381_s25 = sshll.u32 (!%p670_p3), %s723_s24, 3  ;;  %s183_s27 = scalar_lea.sflag (!%p670_p3), [#allocation3], %s723_s24 }
  0x20   : > { %s729_s30 = scalar_lea.vmem (!%p670_p3), [#allocation2], %s381_s25 }
  0x21   : > { %577 = dma.done.wait (%p695_p12), %s183_s27, 128  }
  0x22   : > { %579 = vsyncadd (%p695_p12), %s183_s27, 4294967168 }
  0x23   : > { %581 = dma.done.wait (%p662_p1), [#allocation6], 2048  }
  0x24   : > { %583 = vsyncadd (%p662_p1), [#allocation6], 4294965248  ;;  %v236_v0 = vld [vmem:[#allocation5 + $0x78] sm:$0xff]  ;;  %v235_v1 = vld [vmem:[#allocation5 + $0x70] sm:$0xff]  ;;  %s385_s16 = sshll.u32 %s602_s12, 3  ;;  %s212_s6 = scalar_lea.vmem [#allocation7], %s381_s25 }
  0x25   : > { %237 = vmatpush.msra.mxu0 %v236_v0  ;;  %v234_v2 = vld [vmem:[#allocation5 + $0x68] sm:$0xff]  ;;  %v233_v3 = vld [vmem:[#allocation5 + $0x60] sm:$0xff]  ;;  %v232_v4 = vld [vmem:[#allocation5 + $0x58] sm:$0xff]  ;;  %s271_s29 = scalar_lea.hbm %s782_s2, %s385_s16  ;;  %s273_s7 = sshll.u32 %s212_s6, 4  ;;  %s274_s7 = int_to_ptr.vmem [resolvable:$true] %s273_s7 }
  0x26   : > { %v231_v5 = vld [vmem:[#allocation5 + $0x50] sm:$0xff]  ;;  %v230_v6 = vld [vmem:[#allocation5 + $0x48] sm:$0xff]  ;;  %v229_v7 = vld [vmem:[#allocation5 + $0x40] sm:$0xff]  ;;  %s275_s8 = sshll.u32 %s271_s29, 4  ;;  %s260_s17 = scalar_lea.sflag [#allocation4], %s723_s24  ;;  %s276_s8 = int_to_ptr.hbm [resolvable:$true] %s275_s8 }
  0x27   : > { %238 = vmatpush.msra.mxu0 %v235_v1  ;;  %v228_v8 = vld [vmem:[#allocation5 + $0x38] sm:$0xff]  ;;  %v227_v9 = vld [vmem:[#allocation5 + $0x30] sm:$0xff]  ;;  %v226_v10 = vld [vmem:[#allocation5 + $0x28] sm:$0xff]  ;;  %s538_s18 = sshra.s32 %s276_s8, 4  ;;  %s544_s21 = scalar_lea.hbm %s782_s2, 16  ;;  %s539_s18 = int_to_ptr.hbm [resolvable:$true] %s538_s18 }
  0x28   : > { %v225_v11 = vld [vmem:[#allocation5 + $0x20] sm:$0xff]  ;;  %v224_v12 = vld [vmem:[#allocation5 + $0x18] sm:$0xff]  ;;  %v223_v13 = vld [vmem:[#allocation5 + $0x10] sm:$0xff]  ;;  %s540_s15 = scalar_lea.hbm %s539_s18, 8  ;;  %p545_p10 = scmp.lt.s32.totalorder %s539_s18, %s782_s2 }
  0x29   : > { %239 = vmatpush.msra.mxu0 %v234_v2  ;;  %v222_v14 = vld [vmem:[#allocation5 + $0x8] sm:$0xff]  ;;  %v221_v15 = vld [vmem:[#allocation5] sm:$0xff]  ;;  %v220_v16 = vld [vmem:[%s729_s30] sm:$0xff]  ;;  %p541_p1 = scmp.ne.s32.totalorder %s539_s18, %s540_s15  ;;  %p546_p11 = scmp.lt.s32.totalorder %s544_s21, %s540_s15 }
  0x2b   : > { %240 = vmatpush.msra.mxu0 %v233_v3  ;;  %p542_p3 = pnand %p541_p1, %p701_p4  ;;  %p547_p12 = por %p546_p11, %p545_p10 }
  0x2d   : > { %241 = vmatpush.msra.mxu0 %v232_v4  ;;  %p543_p9 = pneg %p542_p3 }
  0x2f   : > { %242 = vmatpush.msra.mxu0 %v231_v5  ;;  %p548_p13 = pnand %p547_p12, %p543_p9 }
  0x31   : > { %243 = vmatpush.msra.mxu0 %v230_v6 }
  0x33   : > { %244 = vmatpush.msra.mxu0 %v229_v7 }
  0x35   : > { %245 = vmatpush.msra.mxu0 %v228_v8 }
  0x37   : > { %246 = vmatpush.msra.mxu0 %v227_v9 }
  0x39   : > { %247 = vmatpush.msra.mxu0 %v226_v10 }
  0x3b   : > { %248 = vmatpush.msra.mxu0 %v225_v11 }
  0x3d   : > { %249 = vmatpush.msra.mxu0 %v224_v12 }
  0x3f   : > { %250 = vmatpush.msra.mxu0 %v223_v13 }
  0x41   : > { %251 = vmatpush.msra.mxu0 %v222_v14 }
  0x43   : > { %252 = vmatpush.msra.mxu0 %v221_v15 }
  0x44   : > { %253 = vmatmul.f32.vlgmr.msra.gmra.mxu0 %v220_v16 }
  0xc1   : > { %v254_v17 = vpop.f32.mrf.mxu0 }
  0xc2   : > { %258 = vst [vmem:[%s212_s6] sm:$0xff] %v254_v17 }
  0xc3   : > { %551 = shalt.err (!%p548_p13)
}
  0xc4   : > { %394 = dma.vmem_to_hbm [thread:$0]  (%p701_p4), %s274_s7, 128, %s276_s8, %s260_s17  }
  0xc5 PF: > { %s287_s24 = sand.u32 1, %s590_s9   ;;  %p405_p0 = pnand %p377_p6, %p709_p7 }
  0xc6   : > { %s288_s25 = scalar_lea.sflag [#allocation4], %s287_s24 }
  0xc7   : > { %p406_p2 = pneg %p405_p0 }
  0xc9   : > { %585 = dma.done.wait (%p406_p2), %s288_s25, 128  }
  0xca   : > { %587 = vsyncadd (%p406_p2), %s288_s25, 4294967168  ;;  %s19_s14 = sadd.s32 1, %s610_s14   ;;  %s789_s9 = smov %s594_s10 }
  0xcb   : > { %p16_p5 = scmp.ge.s32.totalorder %s19_s14, 4   ;;  %s790_s10 = smov %s598_s11 }
  0xcc   : > { %s791_s11 = smov %s707_s4  ;;  %s792_s12 = smov %s606_s13 }
  0xcd   : > { %s793_s13 = smov %s795_s26  ;;  %18 = sbr.rel (!%p16_p5) target bundleno = 7 (0x7), region = 82 }
  0xd2   :  { %294 = vsyncpa [#allocation3], 1 }
  0xd3   :  { %296 = vsyncpa [#allocation3 + $0x1], 1 }
  0xd4   :  { %297 = vsyncpa [#allocation6], 1 }
  0xd5   :  { %298 = vsyncpa [#allocation4], 1 }
  0xd6   :  { %300 = vsyncpa [#allocation4 + $0x1], 1 }

</bundles_post_ra>
